<compile_context>
chip_gen: v7x
topology: tpu7x:2x2x1
jax: 0.10.0
libtpu: 0.0.40
codegen_flags: <defaults>
</compile_context>

<pallas_src>
import functools

import jax
import jax.numpy as jnp
from jax import lax
from jax.experimental import pallas as pl
from jax.experimental.pallas import tpu as pltpu

# default Loss(bce=1.0, dice=0.5, lovasz=0.0, soft_bce=True)
W_BCE = 1.0
W_DICE = 0.5
W_LOVASZ = 0.0
SMOOTH = 0.1     # SoftBCEWithLogitsLoss(smooth_factor=0.1)
DICE_EPS = 1.0   # SMP DiceLoss default eps=1.0, beta=1.0

LANE = 128
CHUNK_ROWS = 512  # inner-loop chunk: 512x128 f32 = 256 KiB per stream


def _round_down(x, m):
    return (x // m) * m


def _loss_kernel(pr_ref, gt_ref, acc_ref, *, chunk_rows, n_chunks):
    """Grid = (core, step).  acc_ref is the resident (1, 4, 8, 128) per-core accumulator:
       stream 0 -> sum(p), 1 -> sum(g), 2 -> sum(p*g), 3 -> sum(softplus(-p))."""

    @pl.when(pl.program_id(1) == 0)
    def _():
        acc_ref[...] = jnp.zeros_like(acc_ref)

    r = chunk_rows // 8
    s_p = jnp.zeros((8, 128), jnp.float32)
    s_g = jnp.zeros((8, 128), jnp.float32)
    s_pg = jnp.zeros((8, 128), jnp.float32)
    s_sp = jnp.zeros((8, 128), jnp.float32)

    # Statically unrolled chunk loop (n_chunks <= 8 by construction): bounds live
    # f32 temporaries to one chunk and gives the scheduler full visibility.
    for ci in range(n_chunks):
        rows = pl.ds(ci * chunk_rows, chunk_rows)          # static start
        x = pr_ref[rows, :].astype(jnp.float32)            # native dtype streamed in
        g = gt_ref[rows, :].astype(jnp.float32)

        # Activation('sigmoid') with a single EUP push (tanh) instead of exp + recip.
        p = 0.5 * jnp.tanh(0.5 * x) + 0.5
        # softplus(-p) == log1p(exp(-p)); safe since p in (0,1) (no overflow branch needed).
        sp = jnp.log1p(jnp.exp(-p))
        pg = p * g

        def _part(v):
            # (chunk_rows,128) -> (r,8,128) is sublane-group folding (no tile crossing);
            # axis-0 sum is plain vreg adds on the VPU.
            return v.reshape(r, 8, 128).sum(axis=0)

        s_p = s_p + _part(p)
        s_g = s_g + _part(g)
        s_pg = s_pg + _part(pg)
        s_sp = s_sp + _part(sp)

    acc_ref[0, 0] += s_p
    acc_ref[0, 1] += s_g
    acc_ref[0, 2] += s_pg
    acc_ref[0, 3] += s_sp


def hubmap_loss(y_pr, y_gt, *, block_rows=2048, num_cores=2):
    """Loss forward pass: one Pallas streaming-reduction kernel over the whole-tile prefix
    of the lane-dense view + a tiny plain-JAX tail and scalar epilogue.

    # layout: inputs are flattened row-major; when size % 128 == 0 the (rows,128) view is a
    #         free bitcast and the kernel covers nc*steps*block_rows rows of it (no pad, no
    #         mask).  Leftover rows / ragged elements (< nc*block_rows*128) are handled in JAX.
    """
    assert y_pr.shape == y_gt.shape
    total = int(y_pr.size)
    assert total > 0

    block_rows = max(CHUNK_ROWS, min(int(block_rows), 4096))

    pr_flat = y_pr.reshape(-1)
    gt_flat = y_gt.reshape(-1)
    rows = total // LANE            # whole lane-dense rows available
    rem = total - rows * LANE

    nc = num_cores if rows >= 8 * num_cores else 1

    parts = []
    kernel_rows = 0
    if rows >= 8:
        rows_per_core = rows // nc
        if rows_per_core >= CHUNK_ROWS:
            chunk = CHUNK_ROWS
            want = max(chunk, _round_down(block_rows, chunk))
            br = min(want, _round_down(rows_per_core, chunk))
        else:
            br = _round_down(rows_per_core, 8)
            chunk = br
        n_chunks = br // chunk
        steps = rows // (nc * br)                    # >= 1 by construction
        kernel_rows = nc * steps * br                # rows covered by the kernel

        if rem == 0:
            # Free bitcast: pass the full view; the grid only touches the first kernel_rows.
            pr2 = pr_flat.reshape(rows, LANE)
            gt2 = gt_flat.reshape(rows, LANE)
        else:
            # Rare ragged case (size % 128 != 0): a lane-dense 2-D view needs one prefix copy.
            pr2 = lax.slice(pr_flat, (0,), (kernel_rows * LANE,)).reshape(kernel_rows, LANE)
            gt2 = lax.slice(gt_flat, (0,), (kernel_rows * LANE,)).reshape(kernel_rows, LANE)

        kernel = functools.partial(_loss_kernel, chunk_rows=chunk, n_chunks=n_chunks)
        in_spec = pl.BlockSpec((br, LANE), lambda c, i: (c * steps + i, 0))

        n_k = kernel_rows * LANE
        in_bytes = n_k * (pr2.dtype.itemsize + gt2.dtype.itemsize)

        acc = pl.pallas_call(
            kernel,
            out_shape=jax.ShapeDtypeStruct((nc, 4, 8, 128), jnp.float32),
            grid_spec=pltpu.PrefetchScalarGridSpec(
                num_scalar_prefetch=0,
                grid=(nc, steps),
                in_specs=[in_spec, in_spec],
                out_specs=pl.BlockSpec((1, 4, 8, 128), lambda c, i: (c, 0, 0, 0)),
            ),
            compiler_params=pltpu.CompilerParams(
                # c-axis parallel (both v7x TensorCores), step-axis is the reduction.
                dimension_semantics=("parallel", "arbitrary"),
                # Well above actual use (~6-10 MiB), safely below physical VMEM on all chips.
                vmem_limit_bytes=32 * 1024 * 1024,
            ),
            cost_estimate=pl.CostEstimate(
                flops=12 * n_k,
                transcendentals=3 * n_k,
                bytes_accessed=in_bytes + nc * 4 * 8 * 128 * 4,
            ),
        )(pr2, gt2)
        parts.append(acc.sum(axis=(0, 2, 3)))        # [sum(p), sum(g), sum(p*g), sum(sp)]

    # Plain-JAX tail over whatever the kernel did not cover (< nc*block_rows*128 + 128 elems).
    tail_start = kernel_rows * LANE
    if tail_start < total:
        tx = pr_flat[tail_start:].astype(jnp.float32)
        tg = gt_flat[tail_start:].astype(jnp.float32)
        tp = 0.5 * jnp.tanh(0.5 * tx) + 0.5
        tsp = jnp.log1p(jnp.exp(-tp))
        parts.append(jnp.stack([tp.sum(), tg.sum(), (tp * tg).sum(), tsp.sum()]))

    sums = parts[0]
    for extra in parts[1:]:
        sums = sums + extra

    p_sum, g_sum, pg_sum, sp_sum = sums[0], sums[1], sums[2], sums[3]
    bce = ((1.0 - SMOOTH) * p_sum - (1.0 - 2.0 * SMOOTH) * pg_sum + sp_sum) / jnp.float32(total)
    dice = 1.0 - (2.0 * pg_sum + DICE_EPS) / (p_sum + g_sum + DICE_EPS)
    return W_BCE * bce + W_DICE * dice              # + W_LOVASZ * lovasz (weight 0.0, omitted)


def reference_loss(y_pr, y_gt):
    """Pure-JAX reference mirroring the PyTorch module."""
    p = jax.nn.sigmoid(y_pr.astype(jnp.float32))
    g = y_gt.astype(jnp.float32)
    soft_t = g * (1.0 - SMOOTH) + (1.0 - g) * SMOOTH
    bce = jnp.mean(jnp.maximum(p, 0.0) - p * soft_t + jnp.log1p(jnp.exp(-jnp.abs(p))))
    tp = jnp.sum(p * g)
    dice = 1.0 - (2.0 * tp + DICE_EPS) / (jnp.sum(p) + jnp.sum(g) + DICE_EPS)
    return W_BCE * bce + W_DICE * dice


if __name__ == "__main__":
    key = jax.random.PRNGKey(0)
    k1, k2, k3, k4, k5, k6 = jax.random.split(key, 6)

    # Test 1: small NCHW f32 logits + {0,1} f32 masks (2048 elems -> one 8x128 tile per core).
    y_pr = jax.random.normal(k1, (2, 4, 16, 16), dtype=jnp.float32)
    y_gt = (jax.random.uniform(k2, (2, 4, 16, 16)) > 0.5).astype(jnp.float32)
    loss = hubmap_loss(y_pr, y_gt)
    jax.block_until_ready(loss)
    ref = reference_loss(y_pr, y_gt)
    assert jnp.allclose(loss, ref, atol=1e-5, rtol=1e-5), (float(loss), float(ref))

    # Test 2: tiny ragged bf16 input (210 elems, < one lane-dense row) -> pure-JAX tail path.
    y_pr2 = jax.random.normal(k3, (2, 3, 7, 5), dtype=jnp.float32).astype(jnp.bfloat16)
    y_gt2 = (jax.random.uniform(k4, (2, 3, 7, 5)) > 0.5).astype(jnp.bfloat16)
    loss2 = hubmap_loss(y_pr2, y_gt2)
    jax.block_until_ready(loss2)
    ref2 = reference_loss(y_pr2, y_gt2)
    assert jnp.allclose(loss2, ref2, atol=1e-4, rtol=1e-4), (float(loss2), float(ref2))

    # Test 3: exercises the chunked inner loop (1024-row tile = 2x512-row chunks per core)
    # plus the leftover-row JAX tail (rows=2080, kernel covers 2048, 32 rows in the tail).
    y_pr3 = jax.random.normal(k5, (2, 4, 130, 256), dtype=jnp.float32)
    y_gt3 = (jax.random.uniform(k6, (2, 4, 130, 256)) > 0.5).astype(jnp.float32)
    loss3 = hubmap_loss(y_pr3, y_gt3)
    jax.block_until_ready(loss3)
    ref3 = reference_loss(y_pr3, y_gt3)
    assert jnp.allclose(loss3, ref3, atol=5e-5, rtol=5e-5), (float(loss3), float(ref3))

    print("KERNEL_OK")
</pallas_src>

<mosaic_0001>
module attributes {stable_mosaic.version = 11 : i64} {
  func.func @_loss_kernel(%arg0: i32, %arg1: i32, %arg2: memref<8x128xf32, #tpu.memory_space<vmem>>, %arg3: memref<8x128xf32, #tpu.memory_space<vmem>>, %arg4: memref<1x4x8x128xf32, #tpu.memory_space<vmem>>) attributes {dimension_semantics = [#tpu.dimension_semantics<parallel>, #tpu.dimension_semantics<arbitrary>], iteration_bounds = array<i64: 2, 1>, scalar_prefetch = 0 : i64, scratch_operands = 0 : i64, tpu.core_type = #tpu.core_type<tc>, window_params = [{transform_indices = @transform_0, window_bounds = array<i64: 8, 128>}, {transform_indices = @transform_1, window_bounds = array<i64: 8, 128>}, {transform_indices = @transform_2, window_bounds = array<i64: 1, 4, 8, 128>}]} {
    %c0_i32 = arith.constant 0 : i32
    %0 = arith.cmpi eq, %arg1, %c0_i32 : i32
    %1 = arith.extui %0 : i1 to i32
    %c0_i32_0 = arith.constant 0 : i32
    %2 = arith.cmpi ne, %1, %c0_i32_0 : i32
    scf.if %2 {
      %cst_44 = arith.constant 0.000000e+00 : f32
      %57 = vector.broadcast %cst_44 : f32 to vector<1x4x8x128xf32>
      %c0_45 = arith.constant 0 : index
      %c0_46 = arith.constant 0 : index
      %c0_47 = arith.constant 0 : index
      %c0_48 = arith.constant 0 : index
      %58 = vector.load %arg4[%c0_45, %c0_46, %c0_47, %c0_48] : memref<1x4x8x128xf32, #tpu.memory_space<vmem>>, vector<1x4x8x128xf32>
      tpu.vector_store %arg4[%c0_45, %c0_46, %c0_47, %c0_48], %57 {strides = array<i32>} : memref<1x4x8x128xf32, #tpu.memory_space<vmem>>, vector<1x4x8x128xf32>,
    } else {
    }
    %cst = arith.constant 0.000000e+00 : f32
    %3 = vector.broadcast %cst : f32 to vector<8x128xf32>
    %cst_1 = arith.constant 0.000000e+00 : f32
    %4 = vector.broadcast %cst_1 : f32 to vector<8x128xf32>
    %cst_2 = arith.constant 0.000000e+00 : f32
    %5 = vector.broadcast %cst_2 : f32 to vector<8x128xf32>
    %cst_3 = arith.constant 0.000000e+00 : f32
    %6 = vector.broadcast %cst_3 : f32 to vector<8x128xf32>
    %c0 = arith.constant 0 : index
    %c0_4 = arith.constant 0 : index
    %7 = vector.load %arg2[%c0, %c0_4] : memref<8x128xf32, #tpu.memory_space<vmem>>, vector<8x128xf32>
    %c0_5 = arith.constant 0 : index
    %c0_6 = arith.constant 0 : index
    %8 = vector.load %arg3[%c0_5, %c0_6] : memref<8x128xf32, #tpu.memory_space<vmem>>, vector<8x128xf32>
    %cst_7 = arith.constant 5.000000e-01 : f32
    %9 = vector.broadcast %cst_7 : f32 to vector<8x128xf32>
    %10 = arith.mulf %9, %7 : vector<8x128xf32>
    %11 = math.tanh %10 : vector<8x128xf32>
    %cst_8 = arith.constant 5.000000e-01 : f32
    %12 = vector.broadcast %cst_8 : f32 to vector<8x128xf32>
    %13 = arith.mulf %12, %11 : vector<8x128xf32>
    %cst_9 = arith.constant 5.000000e-01 : f32
    %14 = vector.broadcast %cst_9 : f32 to vector<8x128xf32>
    %15 = arith.addf %13, %14 : vector<8x128xf32>
    %cst_10 = arith.constant 0.000000e+00 : f32
    %16 = vector.broadcast %cst_10 : f32 to vector<8x128xf32>
    %17 = arith.subf %16, %15 : vector<8x128xf32>
    %18 = math.exp %17 : vector<8x128xf32>
    %19 = math.log1p %18 : vector<8x128xf32>
    %20 = arith.mulf %15, %8 : vector<8x128xf32>
    %21 = vector.shape_cast %15 : vector<8x128xf32> to vector<1x8x128xf32>
    %cst_11 = arith.constant dense<0.000000e+00> : vector<8x128xf32>
    %22 = vector.multi_reduction <add>, %21, %cst_11 [0] : vector<1x8x128xf32> to vector<8x128xf32>
    %23 = arith.addf %3, %22 : vector<8x128xf32>
    %24 = vector.shape_cast %8 : vector<8x128xf32> to vector<1x8x128xf32>
    %cst_12 = arith.constant dense<0.000000e+00> : vector<8x128xf32>
    %25 = vector.multi_reduction <add>, %24, %cst_12 [0] : vector<1x8x128xf32> to vector<8x128xf32>
    %26 = arith.addf %4, %25 : vector<8x128xf32>
    %27 = vector.shape_cast %20 : vector<8x128xf32> to vector<1x8x128xf32>
    %cst_13 = arith.constant dense<0.000000e+00> : vector<8x128xf32>
    %28 = vector.multi_reduction <add>, %27, %cst_13 [0] : vector<1x8x128xf32> to vector<8x128xf32>
    %29 = arith.addf %5, %28 : vector<8x128xf32>
    %30 = vector.shape_cast %19 : vector<8x128xf32> to vector<1x8x128xf32>
    %cst_14 = arith.constant dense<0.000000e+00> : vector<8x128xf32>
    %31 = vector.multi_reduction <add>, %30, %cst_14 [0] : vector<1x8x128xf32> to vector<8x128xf32>
    %32 = arith.addf %6, %31 : vector<8x128xf32>
    %c0_15 = arith.constant 0 : index
    %c0_16 = arith.constant 0 : index
    %c0_17 = arith.constant 0 : index
    %c0_18 = arith.constant 0 : index
    %33 = vector.load %arg4[%c0_15, %c0_16, %c0_17, %c0_18] : memref<1x4x8x128xf32, #tpu.memory_space<vmem>>, vector<1x1x8x128xf32>
    %34 = vector.shape_cast %33 : vector<1x1x8x128xf32> to vector<8x128xf32>
    %35 = arith.addf %34, %23 : vector<8x128xf32>
    %c0_19 = arith.constant 0 : index
    %c0_20 = arith.constant 0 : index
    %c0_21 = arith.constant 0 : index
    %c0_22 = arith.constant 0 : index
    %36 = vector.load %arg4[%c0_19, %c0_20, %c0_21, %c0_22] : memref<1x4x8x128xf32, #tpu.memory_space<vmem>>, vector<1x1x8x128xf32>
    %37 = vector.shape_cast %36 : vector<1x1x8x128xf32> to vector<8x128xf32>
    %38 = vector.shape_cast %35 : vector<8x128xf32> to vector<1x1x8x128xf32>
    tpu.vector_store %arg4[%c0_19, %c0_20, %c0_21, %c0_22], %38 {strides = array<i32>} : memref<1x4x8x128xf32, #tpu.memory_space<vmem>>, vector<1x1x8x128xf32>,
    %c0_23 = arith.constant 0 : index
    %c1 = arith.constant 1 : index
    %c0_24 = arith.constant 0 : index
    %c0_25 = arith.constant 0 : index
    %39 = vector.load %arg4[%c0_23, %c1, %c0_24, %c0_25] : memref<1x4x8x128xf32, #tpu.memory_space<vmem>>, vector<1x1x8x128xf32>
    %40 = vector.shape_cast %39 : vector<1x1x8x128xf32> to vector<8x128xf32>
    %41 = arith.addf %40, %26 : vector<8x128xf32>
    %c0_26 = arith.constant 0 : index
    %c1_27 = arith.constant 1 : index
    %c0_28 = arith.constant 0 : index
    %c0_29 = arith.constant 0 : index
    %42 = vector.load %arg4[%c0_26, %c1_27, %c0_28, %c0_29] : memref<1x4x8x128xf32, #tpu.memory_space<vmem>>, vector<1x1x8x128xf32>
    %43 = vector.shape_cast %42 : vector<1x1x8x128xf32> to vector<8x128xf32>
    %44 = vector.shape_cast %41 : vector<8x128xf32> to vector<1x1x8x128xf32>
    tpu.vector_store %arg4[%c0_26, %c1_27, %c0_28, %c0_29], %44 {strides = array<i32>} : memref<1x4x8x128xf32, #tpu.memory_space<vmem>>, vector<1x1x8x128xf32>,
    %c0_30 = arith.constant 0 : index
    %c2 = arith.constant 2 : index
    %c0_31 = arith.constant 0 : index
    %c0_32 = arith.constant 0 : index
    %45 = vector.load %arg4[%c0_30, %c2, %c0_31, %c0_32] : memref<1x4x8x128xf32, #tpu.memory_space<vmem>>, vector<1x1x8x128xf32>
    %46 = vector.shape_cast %45 : vector<1x1x8x128xf32> to vector<8x128xf32>
    %47 = arith.addf %46, %29 : vector<8x128xf32>
    %c0_33 = arith.constant 0 : index
    %c2_34 = arith.constant 2 : index
    %c0_35 = arith.constant 0 : index
    %c0_36 = arith.constant 0 : index
    %48 = vector.load %arg4[%c0_33, %c2_34, %c0_35, %c0_36] : memref<1x4x8x128xf32, #tpu.memory_space<vmem>>, vector<1x1x8x128xf32>
    %49 = vector.shape_cast %48 : vector<1x1x8x128xf32> to vector<8x128xf32>
    %50 = vector.shape_cast %47 : vector<8x128xf32> to vector<1x1x8x128xf32>
    tpu.vector_store %arg4[%c0_33, %c2_34, %c0_35, %c0_36], %50 {strides = array<i32>} : memref<1x4x8x128xf32, #tpu.memory_space<vmem>>, vector<1x1x8x128xf32>,
    %c0_37 = arith.constant 0 : index
    %c3 = arith.constant 3 : index
    %c0_38 = arith.constant 0 : index
    %c0_39 = arith.constant 0 : index
    %51 = vector.load %arg4[%c0_37, %c3, %c0_38, %c0_39] : memref<1x4x8x128xf32, #tpu.memory_space<vmem>>, vector<1x1x8x128xf32>
    %52 = vector.shape_cast %51 : vector<1x1x8x128xf32> to vector<8x128xf32>
    %53 = arith.addf %52, %32 : vector<8x128xf32>
    %c0_40 = arith.constant 0 : index
    %c3_41 = arith.constant 3 : index
    %c0_42 = arith.constant 0 : index
    %c0_43 = arith.constant 0 : index
    %54 = vector.load %arg4[%c0_40, %c3_41, %c0_42, %c0_43] : memref<1x4x8x128xf32, #tpu.memory_space<vmem>>, vector<1x1x8x128xf32>
    %55 = vector.shape_cast %54 : vector<1x1x8x128xf32> to vector<8x128xf32>
    %56 = vector.shape_cast %53 : vector<8x128xf32> to vector<1x1x8x128xf32>
    tpu.vector_store %arg4[%c0_40, %c3_41, %c0_42, %c0_43], %56 {strides = array<i32>} : memref<1x4x8x128xf32, #tpu.memory_space<vmem>>, vector<1x1x8x128xf32>,
    return
  }
  func.func @transform_0(%arg0: i32, %arg1: i32) -> (i32, i32) {
    %c1_i32 = arith.constant 1 : i32
    %0 = arith.muli %arg0, %c1_i32 : i32
    %1 = arith.addi %0, %arg1 : i32
    %c0_i32 = arith.constant 0 : i32
    %c0_i32_0 = arith.constant 0 : i32
    return %1, %c0_i32 : i32, i32
  }
  func.func @transform_1(%arg0: i32, %arg1: i32) -> (i32, i32) {
    %c1_i32 = arith.constant 1 : i32
    %0 = arith.muli %arg0, %c1_i32 : i32
    %1 = arith.addi %0, %arg1 : i32
    %c0_i32 = arith.constant 0 : i32
    %c0_i32_0 = arith.constant 0 : i32
    return %1, %c0_i32 : i32, i32
  }
  func.func @transform_2(%arg0: i32, %arg1: i32) -> (i32, i32, i32, i32) {
    %c0_i32 = arith.constant 0 : i32
    %c0_i32_0 = arith.constant 0 : i32
    %c0_i32_1 = arith.constant 0 : i32
    %c0_i32_2 = arith.constant 0 : i32
    return %arg0, %c0_i32, %c0_i32_0, %c0_i32_1 : i32, i32, i32, i32
  }
}

</mosaic_0001>

<bundles_post_ra>
// kernel: tpu_custom_call.1
= control target key start
LH: loop header
LB: loop body
LE: loop exit
PB: predicated region body
PF: predicated region fallthrough
CT: control target
= control target key end

     0   :  { %7 = vsyncpa [#allocation3], 0  ;;  %s877_s0 = inlined_call_operand.hbm [shape: f32[16,128], index: 0, kind: input, shape index: {}]   ;;  %s878_s1 = inlined_call_operand.hbm [shape: f32[16,128], index: 1, kind: input, shape index: {}]   ;;  %s879_s2 = inlined_call_operand.hbm [shape: f32[2,4,8,128], index: 2, kind: output, shape index: {}]  }
   0x1   :  { %9 = vsyncpa [#allocation3 + $0x1], 0 }
   0x2   :  { %10 = vsyncpa [#allocation6], 0 }
   0x3   :  { %12 = vsyncpa [#allocation6 + $0x1], 0 }
   0x4   :  { %13 = vsyncpa [#allocation4], 0 }
   0x5   :  { %15 = vsyncpa [#allocation4 + $0x1], 0  ;;  %s654_s9 = smov 0   ;;  %s656_s10 = smov 0  }
   0x6   :  { %s658_s11 = smov 0   ;;  %s660_s12 = smov 0  }
   0x7   :  { %s662_s13 = smov 0   ;;  %s664_s14 = smov 0  }
   0x8 LB: > { %s386_s15 = sadd.s32 4294967295, %s632_s14   ;;  %s387_s16 = sadd.s32 4294967294, %s632_s14   ;;  %s632_s14 = sphi %s664_s14, %s21_s14   ;;  %s628_s13 = sphi %s662_s13, %s899_s13   ;;  %s624_s12 = sphi %s660_s12, %s898_s12   ;;  %s620_s11 = sphi %s658_s11, %s897_s11   ;;  %s616_s10 = sphi %s656_s10, %s896_s10   ;;  %s612_s9 = sphi %s654_s9, %s895_s9  }
   0x9   : > { %s33_s17 = sadd.s32 1, %s628_s13  ;;  %s42_s18 = sadd.s32 1, %s620_s11 }
   0xa   : > { %p35_p0 = scmp.ge.s32.totalorder %s33_s17, 2  ;;  %p49_p1 = scmp.ne.s32.totalorder %s620_s11, %s616_s10 }
   0xb   : > { %p50_p2 = scmp.eq.s32.totalorder %s632_s14, 0  ;;  %p55_p3 = scmp.ne.s32.totalorder %s616_s10, %s612_s9 }
   0xc   : > { %s901_s17 = smov (%p35_p0, %s33_s17), 0  ;;  %p56_p5 = scmp.eq.s32.totalorder %s386_s15, 0 }
   0xd   : > { %p695_p4 = por %p50_p2, %p49_p1  ;;  %s39_s20 = ssub.s32 %s628_s13, %s901_s17 }
   0xe   : > { %p107_p6 = scmp.eq.s32.totalorder %s386_s15, 1  ;;  %p40_p7 = scmp.eq.s32.totalorder %s39_s20, 0 }
   0xf   : > { %p701_p8 = por %p56_p5, %p55_p3  ;;  %p113_p10 = scmp.eq.s32.totalorder %s387_s16, 1 }
  0x10   : > { %p705_p9 = por %p107_p6, %p49_p1  ;;  %p427_p13 = scmp.lt.s32.totalorder %s632_s14, 2 }
  0x11   : > { %s883_s21 = scalar_select %p701_p8, 1, 0 }
  0x12   : > { %s884_s22 = scalar_select %p705_p9, 1, 0 }
  0x13   : > { %s710_s23 = scalar_select %p40_p7, %s620_s11, %s42_s18  }
  0x14   : > { %p712_p11 = por %p113_p10, %p55_p3  ;;  %s719_s25 = sand.u32 1, %s620_s11  }
  0x15   : > { %s390_s26 = sshll.u32 %s719_s25, 3  ;;  %s391_s27 = sshll.u32 %s628_s13, 7 }
  0x16   : > { %s885_s24 = scalar_select %p712_p11, 1, 0 }
  0x17   : > { %s728_s30 = scalar_lea.hbm %s877_s0, %s391_s27  ;;  %s137_s3 = scalar_lea.vmem [#allocation2], %s390_s26 }
  0x18   : > { %s145_s4 = sshll.u32 %s137_s3, 4  ;;  %p736_p0 = pnand %p427_p13, %p695_p4  ;;  %s732_s4 = int_to_ptr.vmem [resolvable:$true] %s145_s4 }
  0x19   : > { %s134_s6 = scalar_lea.sflag [#allocation3], %s719_s25  ;;  %s486_s7 = scalar_lea.hbm %s728_s30, 128 }
  0x1a   : > { %p487_p3 = scmp.ne.s32.totalorder %s728_s30, %s486_s7  ;;  %p488_p5 = pneg %p736_p0 }
  0x1b   : > { %s491_s16 = scalar_lea.hbm %s877_s0, 256  ;;  %p492_p4 = scmp.lt.u32.totalorder %s728_s30, %s877_s0 }
  0x1c   : > { %p489_p6 = pnand %p488_p5, %p487_p3  ;;  %p493_p10 = scmp.lt.u32.totalorder %s491_s16, %s486_s7 }
  0x1d   : > { %p495_p12 = scmp.lt.u32.totalorder %s486_s7, %s728_s30 }
  0x1e   : > { %p490_p7 = pneg %p489_p6  ;;  %p494_p13 = por %p493_p10, %p492_p4 }
  0x20   : > { %p496_p1 = por %p495_p12, %p494_p13 }
  0x22   : > { %p497_p2 = pnand %p496_p1, %p490_p7 }
  0x24   : > { %500 = shalt.err (!%p497_p2)
}
  0x25   : > { %s501_s20 = scalar_lea.vmem %s732_s4, 128  ;;  %s634_s28 = smov [#allocation2]  }
  0x26   : > { %p502_p3 = scmp.ne.s32.totalorder %s732_s4, %s501_s20  ;;  %s506_s29 = sshll.u32 %s634_s28, 4  ;;  %s507_s29 = int_to_ptr.vmem [resolvable:$false] %s506_s29 }
  0x27   : > { %s508_s3 = scalar_lea.vmem %s507_s29, 256  ;;  %p509_p9 = scmp.lt.s32.totalorder %s732_s4, %s507_s29 }
  0x28   : > { %p504_p6 = pnand %p502_p3, %p488_p5  ;;  %p510_p4 = scmp.lt.s32.totalorder %s508_s3, %s501_s20 }
  0x2a   : > { %p505_p11 = pneg %p504_p6  ;;  %p511_p10 = por %p510_p4, %p509_p9 }
  0x2c   : > { %p512_p12 = pnand %p511_p10, %p505_p11 }
  0x2e   : > { %515 = shalt.err (!%p512_p12)
}
  0x2f   : > { %419 = dma.hbm_to_vmem [thread:$0]  (!%p736_p0), %s728_s30, 128, %s732_s4, %s134_s6  }
  0x30   : > { %p887_p1 = scmp.lt.s32.totalorder %s632_s14, 3  ;;  %p888_p2 = scmp.ge.s32.totalorder %s632_s14, 1 }
  0x31   : > { %s781_s16 = scalar_lea.hbm %s878_s1, %s391_s27  ;;  %s156_s18 = scalar_lea.vmem [#allocation5], %s390_s26 }
  0x32   : > { %p772_p7 = pnand %p888_p2, %p887_p1  ;;  %s164_s19 = sshll.u32 %s156_s18, 4  ;;  %s165_s19 = int_to_ptr.vmem [resolvable:$true] %s164_s19 }
  0x33   : > { %s153_s30 = scalar_lea.sflag [#allocation6], %s719_s25  ;;  %s516_s4 = scalar_lea.hbm %s781_s16, 128 }
  0x34   : > { %s889_s7 = scalar_select %p772_p7, 1, 0 }
  0x35   : > { %p517_p9 = scmp.ne.s32.totalorder %s781_s16, %s516_s4  ;;  %s521_s27 = scalar_lea.hbm %s878_s1, 256 }
  0x36   : > { %p522_p3 = scmp.lt.u32.totalorder %s781_s16, %s878_s1  ;;  %p523_p6 = scmp.lt.u32.totalorder %s521_s27, %s516_s4 }
  0x37   : > { %p519_p11 = pnand %p517_p9, %p488_p5  ;;  %p525_p10 = scmp.lt.u32.totalorder %s516_s4, %s781_s16 }
  0x38   : > { %p524_p4 = por %p523_p6, %p522_p3 }
  0x39   : > { %p520_p13 = pneg %p519_p11 }
  0x3a   : > { %p526_p12 = por %p525_p10, %p524_p4 }
  0x3c   : > { %p527_p1 = pnand %p526_p12, %p520_p13 }
  0x3e   : > { %530 = shalt.err (!%p527_p1)
}
  0x3f   : > { %s531_s25 = scalar_lea.vmem %s165_s19, 128  ;;  %s635_s26 = smov [#allocation5]  }
  0x40   : > { %p532_p2 = scmp.ne.s32.totalorder %s165_s19, %s531_s25  ;;  %s536_s3 = sshll.u32 %s635_s26, 4  ;;  %s537_s3 = int_to_ptr.vmem [resolvable:$false] %s536_s3 }
  0x41   : > { %s538_s8 = scalar_lea.vmem %s537_s3, 256  ;;  %p539_p8 = scmp.lt.s32.totalorder %s165_s19, %s537_s3 }
  0x42   : > { %p534_p9 = pnand %p532_p2, %p488_p5  ;;  %p540_p7 = scmp.lt.s32.totalorder %s538_s8, %s531_s25 }
  0x44   : > { %p535_p11 = pneg %p534_p9  ;;  %p541_p3 = por %p540_p7, %p539_p8 }
  0x46   : > { %p542_p6 = pnand %p541_p3, %p535_p11 }
  0x48   : > { %545 = shalt.err (!%p542_p6)
}
  0x49   : > { %422 = dma.hbm_to_vmem [thread:$0]  (!%p736_p0), %s781_s16, 128, %s165_s19, %s153_s30  }
  0x4a   : > { %p890_p13 = scmp.ne.s32.totalorder %s889_s7, 0 }
  0x4b   : > { %s808_s15 = sand.u32 (!%p890_p13), 1, %s616_s10   ;;  %p891_p5 = scmp.ne.s32.totalorder (!%p890_p13), %s883_s21, 0 }
  0x4c   : > { %173 = sbr.rel (%p890_p13) target bundleno = 150 (0x96), region = 28  ;;  %s395_s18 = sshll.u32 (!%p890_p13), %s808_s15, 3 }
  0x4d   : > { %s176_s4 = scalar_lea.sflag (!%p890_p13), [#allocation3], %s808_s15  ;;  %s179_s6 = scalar_lea.vmem (!%p890_p13), [#allocation2], %s395_s18 }
  0x53   : > { %599 = dma.done.wait (%p891_p5), %s176_s4, 128  }
  0x54   : > { %601 = vsyncadd (%p891_p5), %s176_s4, 4294967168  ;;  %s185_s5 = scalar_lea.sflag [#allocation6], %s808_s15  ;;  %s188_s16 = scalar_lea.vmem [#allocation5], %s395_s18 }
  0x55   : > { %603 = dma.done.wait (%p891_p5), %s185_s5, 128  }
  0x56   : > { %605 = vsyncadd (%p891_p5), %s185_s5, 4294967168  ;;  %s397_s7 = sshll.u32 %s808_s15, 5  ;;  %v224_v0 = vld [vmem:[%s179_s6] sm:$0xff]  ;;  %v225_v1 = vld [vmem:[%s188_s16] sm:$0xff]  ;;  %s409_s21 = sshll.u32 %s624_s12, 9 }
  0x57   : > { %v226_v2 = vmul.f32 0.5, %v224_v0  ;;  %s213_s19 = scalar_lea.vmem [#allocation7], %s397_s7  ;;  %s826_s28 = scalar_lea.hbm %s879_s2, %s409_s21 }
  0x58   : > { %399 = vst [vmem:[%s213_s19 + $0x8] sm:$0xff] %v225_v1  ;;  %s280_s30 = sshll.u32 %s213_s19, 4  ;;  %s267_s29 = scalar_lea.sflag [#allocation4], %s808_s15  ;;  %s828_s30 = int_to_ptr.vmem [resolvable:$true] %s280_s30 }
  0x59   : > { %480 = vtanh.f32 %v226_v2  ;;  %s546_s25 = scalar_lea.vmem %s828_s30, 512  ;;  %p892_p0 = scmp.ne.s32.totalorder %s884_s22, 0 }
  0x5a   : > { %p547_p8 = scmp.ne.s32.totalorder %s828_s30, %s546_s25  ;;  %s636_s12 = smov [#allocation7]  }
  0x5b   : > { %s550_s26 = sshll.u32 %s636_s12, 4  ;;  %s551_s26 = int_to_ptr.vmem [resolvable:$false] %s550_s26 }
  0x5c   : > { %p548_p7 = pnand %p547_p8, %p892_p0  ;;  %s552_s3 = scalar_lea.vmem %s551_s26, 1024 }
  0x5d   : > { %p553_p10 = scmp.lt.s32.totalorder %s828_s30, %s551_s26  ;;  %p554_p12 = scmp.lt.s32.totalorder %s552_s3, %s546_s25 }
  0x5e   : > { %p549_p4 = pneg %p548_p7 }
  0x5f   : > { %p555_p1 = por %p554_p12, %p553_p10 }
  0x61   : > { %p556_p2 = pnand %p555_p1, %p549_p4 }
  0x63   : > { %v481_v3 = vpop.eup %480 }
  0x64   : > { %v228_v4 = vmul.f32 0.5, %v481_v3 }
  0x66   : > { %v229_v5 = vadd.f32 0.5, %v228_v4 }
  0x68   : > { %v230_v6 = vsub.f32 0.0, %v229_v5  ;;  %v242_v7 = vmul.f32 %v229_v5, %v225_v1  ;;  %253 = vst [vmem:[%s213_s19] sm:$0xff] %v229_v5 }
  0x6a   : > { %v231_v8 = vmul.f32 1.442695, %v230_v6  ;;  %401 = vst [vmem:[%s213_s19 + $0x10] sm:$0xff] %v242_v7 }
  0x6c   : > { %482 = vpow2.f32 %v231_v8 }
  0x76   : > { %v483_v9 = vpop.eup %482 }
  0x77   : > { %v233_v10 = vadd.f32 1.0, %v483_v9  ;;  %v236_v11 = vmul.f32 -0.5, %v483_v9  ;;  %v239_v13 = vand.u32 2147483647, %v483_v9 }
  0x79   : > { %484 = vlog2.f32 %v233_v10  ;;  %v237_v12 = vadd.f32 1.0, %v236_v11  ;;  %vm240_vm0 = vcmp.lt.f32.partialorder %v239_v13, 0.0004427343 }
  0x7b   : > { %v238_v14 = vmul.f32 %v483_v9, %v237_v12 }
  0x83   : > { %v485_v15 = vpop.eup %484 }
  0x84   : > { %v235_v16 = vmul.f32 0.6931472, %v485_v15 }
  0x86   : > { %v241_v17 = vsel %vm240_vm0, %v238_v14, %v235_v16 }
  0x87   : > { %403 = vst [vmem:[%s213_s19 + $0x18] sm:$0xff] %v241_v17 }
  0x88   : > { %559 = shalt.err (!%p556_p2)
}
  0x89   : > { %s560_s8 = scalar_lea.hbm %s826_s28, 512  ;;  %s564_s6 = scalar_lea.hbm %s879_s2, 1024 }
  0x8a   : > { %p561_p9 = scmp.ne.s32.totalorder %s826_s28, %s560_s8  ;;  %p565_p6 = scmp.lt.u32.totalorder %s826_s28, %s879_s2 }
  0x8b   : > { %p566_p13 = scmp.lt.u32.totalorder %s564_s6, %s560_s8  ;;  %p568_p8 = scmp.lt.u32.totalorder %s560_s8, %s826_s28 }
  0x8c   : > { %p562_p11 = pnand %p561_p9, %p892_p0 }
  0x8d   : > { %p567_p5 = por %p566_p13, %p565_p6 }
  0x8e   : > { %p563_p3 = pneg %p562_p11 }
  0x8f   : > { %p569_p7 = por %p568_p8, %p567_p5 }
  0x91   : > { %p570_p4 = pnand %p569_p7, %p563_p3 }
  0x93   : > { %573 = shalt.err (!%p570_p4)
}
  0x94   : > { %s637_s7 = smov 128   ;;  %s638_s19 = smov 8  }
  0x95   : > { %414 = dma.vmem_to_hbm [thread:$0]  (%p892_p0), %s828_s30, 512, %s826_s28, %s267_s29, %s637_s7, %s637_s7, %s638_s19  }
  0x96 PF: > { %s295_s21 = sand.u32 1, %s612_s9   ;;  %p893_p10 = scmp.ne.s32.totalorder %s885_s24, 0 }
  0x97   : > { %p894_p12 = scmp.ge.s32.totalorder %s632_s14, 2  ;;  %s296_s20 = scalar_lea.sflag [#allocation4], %s295_s21 }
  0x99   : > { %p424_p1 = pnand %p894_p12, %p893_p10 }
  0x9b   : > { %607 = dma.done.wait (!%p424_p1), %s296_s20, 512  }
  0x9c   : > { %609 = vsyncadd (!%p424_p1), %s296_s20, 4294966784  ;;  %s21_s14 = sadd.s32 1, %s632_s14   ;;  %s895_s9 = smov %s616_s10 }
  0x9d   : > { %p18_p2 = scmp.ge.s32.totalorder %s21_s14, 4   ;;  %s896_s10 = smov %s620_s11 }
  0x9e   : > { %s897_s11 = smov %s710_s23  ;;  %s898_s12 = smov %s628_s13 }
  0x9f   : > { %s899_s13 = smov %s901_s17  ;;  %20 = sbr.rel (!%p18_p2) target bundleno = 8 (0x8), region = 93 }
  0xa6   :  { %301 = vsyncpa [#allocation3], 1 }
  0xa7   :  { %303 = vsyncpa [#allocation3 + $0x1], 1 }
  0xa8   :  { %304 = vsyncpa [#allocation6], 1 }
  0xa9   :  { %306 = vsyncpa [#allocation6 + $0x1], 1 }
  0xaa   :  { %307 = vsyncpa [#allocation4], 1 }
  0xab   :  { %309 = vsyncpa [#allocation4 + $0x1], 1 }

</bundles_post_ra>
